<compile_context>
chip_gen: v5e
topology: v5e:2x2
jax: 0.10.0
libtpu: 0.0.40
codegen_flags: <defaults>
</compile_context>

<pallas_src>
import jax
import jax.numpy as jnp
from jax import lax
from jax.experimental import pallas as pl
from jax.experimental.pallas import tpu as pltpu

DILATION = 4
PAD = 4          # padding == dilation_rate in the reference module
EPS = 1e-5       # nn.BatchNorm2d default


def _tap_shifts(W):
    shifts = []
    for t in range(9):
        dy = (t // 3) * DILATION - PAD          # -4, 0, +4
        dx = (t % 3) * DILATION - PAD
        shifts.append(dy * W + dx)
    return shifts


# --------------------------------------------------------------------------- #
# Pallas kernel: B_blk images per grid step, pixels-in-lanes layout (C, N)
# with N = B_blk * H * W.
# --------------------------------------------------------------------------- #
def _make_kernel(H, W, B_blk):
    HW = H * W
    N = B_blk * HW
    shifts = _tap_shifts(W)

    def kernel(x_ref, m_ref, w1_ref, b1_ref, wd1_ref, bd1_ref,
               wd2_ref, bd2_ref, w3_ref, b3_ref, out_ref):
        x = x_ref[0]                                    # (C, N) bf16
        masks = m_ref[...]                              # (9*mid_pad, N) f32

        # ---- reduce_conv: 1x1 conv (+ folded BN) + ReLU ---------------------
        # bf16 operands straight into the MXU, f32 accumulation.
        y = jnp.dot(w1_ref[...], x, preferred_element_type=jnp.float32)
        y = jnp.maximum(y + b1_ref[...], 0.0)           # (mid_pad, N) f32

        # ---- dilated 3x3 conv (dilation=4, pad=4) as one fused matmul -------
        def dilated_conv(z, wd, bd):
            # 9 shifted taps via XLU rolls.  Any wrap-around (off-image or
            # across the B_blk image boundary inside the lane dim) is killed
            # by the precomputed validity masks.  Each tap is an aligned
            # (8, N) tile, so the concatenate is plain aligned copies.
            taps = [z if s == 0 else pltpu.roll(z, shift=(-s) % N, axis=1)
                    for s in shifts]
            tmat = jnp.concatenate(taps, axis=0) * masks    # (9*mid_pad, N)
            o = jnp.dot(wd, tmat, preferred_element_type=jnp.float32)
            return jnp.maximum(o + bd, 0.0)                 # (mid_pad, N)

        y = dilated_conv(y, wd1_ref[...], bd1_ref[...])
        y = dilated_conv(y, wd2_ref[...], bd2_ref[...])

        # ---- final_conv: 1x1 conv -> 1 channel (+ folded BN), lane-dense ----
        s = jnp.dot(w3_ref[...], y, preferred_element_type=jnp.float32)
        out_ref[0] = (s + b3_ref[...]).astype(out_ref.dtype)   # (1, N)

    return kernel


# Host-side per-tap validity masks, broadcast to full sublane tiles:
# rows [t*mid_pad, (t+1)*mid_pad) all equal mask of tap t; lanes tiled B_blk x.
def _make_tap_masks(H, W, B_blk, mid_pad):
    HW = H * W
    p = jnp.arange(HW)
    ph, pw = p // W, p % W
    rows = []
    for t in range(9):
        dy = (t // 3) * DILATION - PAD
        dx = (t % 3) * DILATION - PAD
        valid = ((ph + dy >= 0) & (ph + dy < H) &
                 (pw + dx >= 0) & (pw + dx < W)).astype(jnp.float32)
        rows.append(jnp.broadcast_to(valid[None, :], (mid_pad, HW)))
    m = jnp.concatenate(rows, axis=0)                 # (9*mid_pad, HW)
    return jnp.tile(m, (1, B_blk))                    # (9*mid_pad, B_blk*HW)


# --------------------------------------------------------------------------- #
# Wrappers: NCHW in/out, folded-BN params, pallas_call plumbing.
# --------------------------------------------------------------------------- #
def spatial_attention_map_pallas(x_nchw, fp, num_steps=None):
    """Returns the (B, 1, H, W) attention map (before expand_as)."""
    B, C, H, W = x_nchw.shape
    HW = H * W
    mid_pad = fp['w1'].shape[0]
    if num_steps is None:
        # 2 parallel steps feed both v7x TensorCores; on single-TC v5e/v6e a
        # caller can pass num_steps=1 to amortize all per-step overhead.
        num_steps = min(B, 2)
    B_blk = pl.cdiv(B, num_steps)
    B_pad = num_steps * B_blk
    N = B_blk * HW

    x2 = x_nchw.reshape(B, C, HW)
    if B_pad != B:
        x2 = jnp.pad(x2, ((0, B_pad - B), (0, 0), (0, 0)))
    # pixels-in-lanes: B_blk images side by side along the lane dimension.
    x2 = (x2.reshape(num_steps, B_blk, C, HW)
             .transpose(0, 2, 1, 3)
             .reshape(num_steps, C, N)
             .astype(jnp.bfloat16))

    masks = _make_tap_masks(H, W, B_blk, mid_pad)

    attn = pl.pallas_call(
        _make_kernel(H, W, B_blk),
        out_shape=jax.ShapeDtypeStruct((num_steps, 1, N), jnp.float32),
        grid_spec=pltpu.PrefetchScalarGridSpec(
            num_scalar_prefetch=0,
            grid=(num_steps,),
            in_specs=[
                pl.BlockSpec((1, C, N), lambda s: (s, 0, 0)),             # x
                pl.BlockSpec((9 * mid_pad, N), lambda s: (0, 0)),         # masks
                pl.BlockSpec((mid_pad, C), lambda s: (0, 0)),             # w1
                pl.BlockSpec((mid_pad, 1), lambda s: (0, 0)),             # b1
                pl.BlockSpec((mid_pad, 9 * mid_pad), lambda s: (0, 0)),   # wd1
                pl.BlockSpec((mid_pad, 1), lambda s: (0, 0)),             # bd1
                pl.BlockSpec((mid_pad, 9 * mid_pad), lambda s: (0, 0)),   # wd2
                pl.BlockSpec((mid_pad, 1), lambda s: (0, 0)),             # bd2
                pl.BlockSpec((1, mid_pad), lambda s: (0, 0)),             # w3
                pl.BlockSpec((1, 1), lambda s: (0, 0)),                   # b3
            ],
            out_specs=pl.BlockSpec((1, 1, N), lambda s: (s, 0, 0)),
        ),
        compiler_params=pltpu.CompilerParams(dimension_semantics=("parallel",)),
    )(x2, masks, fp['w1'], fp['b1'], fp['wd1'], fp['bd1'],
      fp['wd2'], fp['bd2'], fp['w3'], fp['b3'])

    return attn.reshape(B_pad, 1, H, W)[:B]


def spatial_attention_pallas(x_nchw, fp, num_steps=None):
    B, C, H, W = x_nchw.shape
    attn = spatial_attention_map_pallas(x_nchw, fp, num_steps)
    # expand_as(x) to match the PyTorch module's output.  In real BAM use,
    # fuse the downstream consumer (e.g. x * attn) with this broadcast rather
    # than materializing a full (B, C, H, W) tensor.
    return jnp.broadcast_to(attn, (B, C, H, W)).astype(x_nchw.dtype)


# --------------------------------------------------------------------------- #
# Parameter construction (deterministic, synthetic) and BN folding.
# --------------------------------------------------------------------------- #
def fold_bn(w, b, gamma, beta, mean, var):
    scale = gamma / jnp.sqrt(var + EPS)          # per out-channel (last dim of w)
    return w * scale, (b - mean) * scale + beta


def make_params(key, channel, reduction=16):
    mid = channel // reduction
    ks = jax.random.split(key, 16)

    def bn_params(k, c):
        a, b2, c2, d = jax.random.split(k, 4)
        return dict(gamma=1.0 + 0.1 * jax.random.normal(a, (c,)),
                    beta=0.05 * jax.random.normal(b2, (c,)),
                    mean=0.1 * jax.random.normal(c2, (c,)),
                    var=1.0 + 0.2 * jnp.abs(jax.random.normal(d, (c,))))

    p = dict(
        w1=0.1 * jax.random.normal(ks[0], (channel, mid)),        # 1x1, (Cin, Cout)
        b1=0.05 * jax.random.normal(ks[1], (mid,)),
        bn1=bn_params(ks[2], mid),
        wd1=0.1 * jax.random.normal(ks[3], (3, 3, mid, mid)),     # HWIO
        bd1=0.05 * jax.random.normal(ks[4], (mid,)),
        bnd1=bn_params(ks[5], mid),
        wd2=0.1 * jax.random.normal(ks[6], (3, 3, mid, mid)),     # HWIO
        bd2=0.05 * jax.random.normal(ks[7], (mid,)),
        bnd2=bn_params(ks[8], mid),
        w3=0.1 * jax.random.normal(ks[9], (mid, 1)),              # 1x1, (Cin, 1)
        b3=0.05 * jax.random.normal(ks[10], (1,)),
        bn3=bn_params(ks[11], 1),
    )
    return p


def fold_params(p):
    mid = p['w1'].shape[1]
    mid_pad = max(8, -(-mid // 8) * 8)           # round up to a full sublane tile
    pad_out = mid_pad - mid

    w1f, b1f = fold_bn(p['w1'], p['b1'], **p['bn1'])          # (C, mid), (mid,)
    wd1f, bd1f = fold_bn(p['wd1'], p['bd1'], **p['bnd1'])     # (3,3,mid,mid) HWIO
    wd2f, bd2f = fold_bn(p['wd2'], p['bd2'], **p['bnd2'])
    w3f, b3f = fold_bn(p['w3'], p['b3'], **p['bn3'])          # (mid, 1), (1,)

    def pad_rows(a):                             # zero-pad the out-channel (sublane) dim
        return jnp.pad(a, ((0, pad_out),) + ((0, 0),) * (a.ndim - 1))

    def wd2d(wd):
        # HWIO -> (out, ky, kx, in); pad `in` to mid_pad, flatten taps, pad `out`.
        # Column index = t*mid_pad + cin with t = ky*3 + kx, matching the
        # kernel's tap-concatenation order.
        w = jnp.transpose(wd, (3, 0, 1, 2))                          # (mid,3,3,mid)
        w = jnp.pad(w, ((0, 0), (0, 0), (0, 0), (0, pad_out)))       # (mid,3,3,mid_pad)
        w = w.reshape(mid, 9 * mid_pad)
        return pad_rows(w)                                           # (mid_pad, 9*mid_pad)

    return dict(
        w1=pad_rows(w1f.T).astype(jnp.bfloat16),                     # (mid_pad, C) bf16
        b1=pad_rows(b1f.reshape(mid, 1)).astype(jnp.float32),        # (mid_pad, 1)
        wd1=wd2d(wd1f).astype(jnp.float32),
        bd1=pad_rows(bd1f.reshape(mid, 1)).astype(jnp.float32),
        wd2=wd2d(wd2f).astype(jnp.float32),
        bd2=pad_rows(bd2f.reshape(mid, 1)).astype(jnp.float32),
        w3=jnp.pad(w3f.T, ((0, 0), (0, pad_out))).astype(jnp.float32),  # (1, mid_pad)
        b3=b3f.reshape(1, 1).astype(jnp.float32),
    )


# Pure-JAX reference (uses the *unfolded* params: validates BN folding too).
def spatial_attention_ref(x_nchw, p):
    x = jnp.transpose(x_nchw, (0, 2, 3, 1)).astype(jnp.float32)   # NHWC

    def bn(y, gamma, beta, mean, var):
        return (y - mean) / jnp.sqrt(var + EPS) * gamma + beta

    def conv1x1(y, w, b):
        return jnp.einsum('bhwc,cd->bhwd', y, w) + b

    def dconv(y, w, b):
        return lax.conv_general_dilated(
            y, w, window_strides=(1, 1), padding=((PAD, PAD), (PAD, PAD)),
            rhs_dilation=(DILATION, DILATION),
            dimension_numbers=('NHWC', 'HWIO', 'NHWC')) + b

    y = jax.nn.relu(bn(conv1x1(x, p['w1'], p['b1']), **p['bn1']))
    y = jax.nn.relu(bn(dconv(y, p['wd1'], p['bd1']), **p['bnd1']))
    y = jax.nn.relu(bn(dconv(y, p['wd2'], p['bd2']), **p['bnd2']))
    y = bn(conv1x1(y, p['w3'], p['b3']), **p['bn3'])               # (B,H,W,1)
    y = jnp.broadcast_to(y, x.shape)                               # expand_as(x)
    return jnp.transpose(y, (0, 3, 1, 2))                          # back to NCHW


if __name__ == "__main__":
    B, C, H, W = 2, 64, 16, 16        # channel=64, reduction=16 -> mid=4
    key = jax.random.PRNGKey(0)
    kx, kp = jax.random.split(key)
    x = jax.random.normal(kx, (B, C, H, W), dtype=jnp.float32)

    params = make_params(kp, C, reduction=16)
    folded = fold_params(params)

    fwd = jax.jit(spatial_attention_pallas)
    out = jax.block_until_ready(fwd(x, folded))

    ref = jax.block_until_ready(spatial_attention_ref(x, params))
    assert out.shape == x.shape
    max_err = float(jnp.max(jnp.abs(out - ref)))
    # Tolerance covers the bf16 quantization of x / w1 feeding the first matmul.
    assert max_err < 2e-2, f"mismatch vs reference: {max_err}"

    print("KERNEL_OK")
</pallas_src>

<mosaic_0001>
module attributes {stable_mosaic.version = 11 : i64} {
  func.func @kernel(%arg0: i32, %arg1: memref<1x64x256xbf16, #tpu.memory_space<vmem>>, %arg2: memref<72x256xf32, #tpu.memory_space<vmem>>, %arg3: memref<8x64xbf16, #tpu.memory_space<vmem>>, %arg4: memref<8x1xf32, #tpu.memory_space<vmem>>, %arg5: memref<8x72xf32, #tpu.memory_space<vmem>>, %arg6: memref<8x1xf32, #tpu.memory_space<vmem>>, %arg7: memref<8x72xf32, #tpu.memory_space<vmem>>, %arg8: memref<8x1xf32, #tpu.memory_space<vmem>>, %arg9: memref<1x8xf32, #tpu.memory_space<vmem>>, %arg10: memref<1x1xf32, #tpu.memory_space<vmem>>, %arg11: memref<1x1x256xf32, #tpu.memory_space<vmem>>) attributes {dimension_semantics = [#tpu.dimension_semantics<parallel>], iteration_bounds = array<i64: 2>, scalar_prefetch = 0 : i64, scratch_operands = 0 : i64, tpu.core_type = #tpu.core_type<tc>, window_params = [{transform_indices = @transform_0, window_bounds = array<i64: 1, 64, 256>}, {pipeline_mode = #tpu.pipeline_mode<synchronous>, transform_indices = @transform_1, window_bounds = array<i64: 72, 256>}, {pipeline_mode = #tpu.pipeline_mode<synchronous>, transform_indices = @transform_2, window_bounds = array<i64: 8, 64>}, {pipeline_mode = #tpu.pipeline_mode<synchronous>, transform_indices = @transform_3, window_bounds = array<i64: 8, 1>}, {pipeline_mode = #tpu.pipeline_mode<synchronous>, transform_indices = @transform_4, window_bounds = array<i64: 8, 72>}, {pipeline_mode = #tpu.pipeline_mode<synchronous>, transform_indices = @transform_5, window_bounds = array<i64: 8, 1>}, {pipeline_mode = #tpu.pipeline_mode<synchronous>, transform_indices = @transform_6, window_bounds = array<i64: 8, 72>}, {pipeline_mode = #tpu.pipeline_mode<synchronous>, transform_indices = @transform_7, window_bounds = array<i64: 8, 1>}, {pipeline_mode = #tpu.pipeline_mode<synchronous>, transform_indices = @transform_8, window_bounds = array<i64: 1, 8>}, {pipeline_mode = #tpu.pipeline_mode<synchronous>, transform_indices = @transform_9, window_bounds = array<i64: 1, 1>}, {transform_indices = @transform_10, window_bounds = array<i64: 1, 1, 256>}]} {
    %c0 = arith.constant 0 : index
    %c0_0 = arith.constant 0 : index
    %c0_1 = arith.constant 0 : index
    %0 = vector.load %arg1[%c0, %c0_0, %c0_1] : memref<1x64x256xbf16, #tpu.memory_space<vmem>>, vector<1x64x256xbf16>
    %1 = vector.shape_cast %0 : vector<1x64x256xbf16> to vector<64x256xbf16>
    %c0_2 = arith.constant 0 : index
    %c0_3 = arith.constant 0 : index
    %2 = vector.load %arg2[%c0_2, %c0_3] : memref<72x256xf32, #tpu.memory_space<vmem>>, vector<72x256xf32>
    %c0_4 = arith.constant 0 : index
    %c0_5 = arith.constant 0 : index
    %3 = vector.load %arg3[%c0_4, %c0_5] : memref<8x64xbf16, #tpu.memory_space<vmem>>, vector<8x64xbf16>
    %cst = arith.constant dense<0.000000e+00> : vector<8x256xf32>
    %4 = tpu.matmul %3, %1, %cst {dimension_numbers = #tpu.dot_dimension_numbers<[1], [0], [0], [1], [0, 0, 1, 1], [], []>} : vector<8x64xbf16>, vector<64x256xbf16>, vector<8x256xf32> -> vector<8x256xf32>
    %c0_6 = arith.constant 0 : index
    %c0_7 = arith.constant 0 : index
    %5 = vector.load %arg4[%c0_6, %c0_7] : memref<8x1xf32, #tpu.memory_space<vmem>>, vector<8x1xf32>
    %6 = vector.broadcast %5 : vector<8x1xf32> to vector<8x256xf32>
    %7 = arith.addf %4, %6 : vector<8x256xf32>
    %cst_8 = arith.constant 0.000000e+00 : f32
    %8 = vector.broadcast %cst_8 : f32 to vector<8x256xf32>
    %9 = arith.maximumf %7, %8 : vector<8x256xf32>
    %c0_9 = arith.constant 0 : index
    %c0_10 = arith.constant 0 : index
    %10 = vector.load %arg5[%c0_9, %c0_10] : memref<8x72xf32, #tpu.memory_space<vmem>>, vector<8x72xf32>
    %c0_11 = arith.constant 0 : index
    %c0_12 = arith.constant 0 : index
    %11 = vector.load %arg6[%c0_11, %c0_12] : memref<8x1xf32, #tpu.memory_space<vmem>>, vector<8x1xf32>
    %c68_i32 = arith.constant 68 : i32
    %12 = tpu.dynamic_rotate %9 by %c68_i32 dim 1 : vector<8x256xf32>, i32 -> vector<8x256xf32>
    %c64_i32 = arith.constant 64 : i32
    %13 = tpu.dynamic_rotate %9 by %c64_i32 dim 1 : vector<8x256xf32>, i32 -> vector<8x256xf32>
    %c60_i32 = arith.constant 60 : i32
    %14 = tpu.dynamic_rotate %9 by %c60_i32 dim 1 : vector<8x256xf32>, i32 -> vector<8x256xf32>
    %c4_i32 = arith.constant 4 : i32
    %15 = tpu.dynamic_rotate %9 by %c4_i32 dim 1 : vector<8x256xf32>, i32 -> vector<8x256xf32>
    %c252_i32 = arith.constant 252 : i32
    %16 = tpu.dynamic_rotate %9 by %c252_i32 dim 1 : vector<8x256xf32>, i32 -> vector<8x256xf32>
    %c196_i32 = arith.constant 196 : i32
    %17 = tpu.dynamic_rotate %9 by %c196_i32 dim 1 : vector<8x256xf32>, i32 -> vector<8x256xf32>
    %c192_i32 = arith.constant 192 : i32
    %18 = tpu.dynamic_rotate %9 by %c192_i32 dim 1 : vector<8x256xf32>, i32 -> vector<8x256xf32>
    %c188_i32 = arith.constant 188 : i32
    %19 = tpu.dynamic_rotate %9 by %c188_i32 dim 1 : vector<8x256xf32>, i32 -> vector<8x256xf32>
    %20 = tpu.concatenate %12, %13, %14, %15, %9, %16, %17, %18, %19 in 0 : vector<8x256xf32>, vector<8x256xf32>, vector<8x256xf32>, vector<8x256xf32>, vector<8x256xf32>, vector<8x256xf32>, vector<8x256xf32>, vector<8x256xf32>, vector<8x256xf32> -> vector<72x256xf32>
    %21 = arith.mulf %20, %2 : vector<72x256xf32>
    %cst_13 = arith.constant dense<0.000000e+00> : vector<8x256xf32>
    %22 = tpu.matmul %10, %21, %cst_13 {dimension_numbers = #tpu.dot_dimension_numbers<[1], [0], [0], [1], [0, 0, 1, 1], [], []>} : vector<8x72xf32>, vector<72x256xf32>, vector<8x256xf32> -> vector<8x256xf32>
    %23 = vector.broadcast %11 : vector<8x1xf32> to vector<8x256xf32>
    %24 = arith.addf %22, %23 : vector<8x256xf32>
    %cst_14 = arith.constant 0.000000e+00 : f32
    %25 = vector.broadcast %cst_14 : f32 to vector<8x256xf32>
    %26 = arith.maximumf %24, %25 : vector<8x256xf32>
    %c0_15 = arith.constant 0 : index
    %c0_16 = arith.constant 0 : index
    %27 = vector.load %arg7[%c0_15, %c0_16] : memref<8x72xf32, #tpu.memory_space<vmem>>, vector<8x72xf32>
    %c0_17 = arith.constant 0 : index
    %c0_18 = arith.constant 0 : index
    %28 = vector.load %arg8[%c0_17, %c0_18] : memref<8x1xf32, #tpu.memory_space<vmem>>, vector<8x1xf32>
    %c68_i32_19 = arith.constant 68 : i32
    %29 = tpu.dynamic_rotate %26 by %c68_i32_19 dim 1 : vector<8x256xf32>, i32 -> vector<8x256xf32>
    %c64_i32_20 = arith.constant 64 : i32
    %30 = tpu.dynamic_rotate %26 by %c64_i32_20 dim 1 : vector<8x256xf32>, i32 -> vector<8x256xf32>
    %c60_i32_21 = arith.constant 60 : i32
    %31 = tpu.dynamic_rotate %26 by %c60_i32_21 dim 1 : vector<8x256xf32>, i32 -> vector<8x256xf32>
    %c4_i32_22 = arith.constant 4 : i32
    %32 = tpu.dynamic_rotate %26 by %c4_i32_22 dim 1 : vector<8x256xf32>, i32 -> vector<8x256xf32>
    %c252_i32_23 = arith.constant 252 : i32
    %33 = tpu.dynamic_rotate %26 by %c252_i32_23 dim 1 : vector<8x256xf32>, i32 -> vector<8x256xf32>
    %c196_i32_24 = arith.constant 196 : i32
    %34 = tpu.dynamic_rotate %26 by %c196_i32_24 dim 1 : vector<8x256xf32>, i32 -> vector<8x256xf32>
    %c192_i32_25 = arith.constant 192 : i32
    %35 = tpu.dynamic_rotate %26 by %c192_i32_25 dim 1 : vector<8x256xf32>, i32 -> vector<8x256xf32>
    %c188_i32_26 = arith.constant 188 : i32
    %36 = tpu.dynamic_rotate %26 by %c188_i32_26 dim 1 : vector<8x256xf32>, i32 -> vector<8x256xf32>
    %37 = tpu.concatenate %29, %30, %31, %32, %26, %33, %34, %35, %36 in 0 : vector<8x256xf32>, vector<8x256xf32>, vector<8x256xf32>, vector<8x256xf32>, vector<8x256xf32>, vector<8x256xf32>, vector<8x256xf32>, vector<8x256xf32>, vector<8x256xf32> -> vector<72x256xf32>
    %38 = arith.mulf %37, %2 : vector<72x256xf32>
    %cst_27 = arith.constant dense<0.000000e+00> : vector<8x256xf32>
    %39 = tpu.matmul %27, %38, %cst_27 {dimension_numbers = #tpu.dot_dimension_numbers<[1], [0], [0], [1], [0, 0, 1, 1], [], []>} : vector<8x72xf32>, vector<72x256xf32>, vector<8x256xf32> -> vector<8x256xf32>
    %40 = vector.broadcast %28 : vector<8x1xf32> to vector<8x256xf32>
    %41 = arith.addf %39, %40 : vector<8x256xf32>
    %cst_28 = arith.constant 0.000000e+00 : f32
    %42 = vector.broadcast %cst_28 : f32 to vector<8x256xf32>
    %43 = arith.maximumf %41, %42 : vector<8x256xf32>
    %c0_29 = arith.constant 0 : index
    %c0_30 = arith.constant 0 : index
    %44 = vector.load %arg9[%c0_29, %c0_30] : memref<1x8xf32, #tpu.memory_space<vmem>>, vector<1x8xf32>
    %cst_31 = arith.constant dense<0.000000e+00> : vector<1x256xf32>
    %45 = tpu.matmul %44, %43, %cst_31 {dimension_numbers = #tpu.dot_dimension_numbers<[1], [0], [0], [1], [0, 0, 1, 1], [], []>} : vector<1x8xf32>, vector<8x256xf32>, vector<1x256xf32> -> vector<1x256xf32>
    %c0_32 = arith.constant 0 : index
    %c0_33 = arith.constant 0 : index
    %46 = vector.load %arg10[%c0_32, %c0_33] : memref<1x1xf32, #tpu.memory_space<vmem>>, vector<1x1xf32>
    %47 = vector.broadcast %46 : vector<1x1xf32> to vector<1x256xf32>
    %48 = arith.addf %45, %47 : vector<1x256xf32>
    %c0_34 = arith.constant 0 : index
    %c0_35 = arith.constant 0 : index
    %c0_36 = arith.constant 0 : index
    %49 = vector.load %arg11[%c0_34, %c0_35, %c0_36] : memref<1x1x256xf32, #tpu.memory_space<vmem>>, vector<1x1x256xf32>
    %50 = vector.shape_cast %49 : vector<1x1x256xf32> to vector<1x256xf32>
    %51 = vector.shape_cast %48 : vector<1x256xf32> to vector<1x1x256xf32>
    tpu.vector_store %arg11[%c0_34, %c0_35, %c0_36], %51 {strides = array<i32>} : memref<1x1x256xf32, #tpu.memory_space<vmem>>, vector<1x1x256xf32>,
    return
  }
  func.func @transform_0(%arg0: i32) -> (i32, i32, i32) {
    %c0_i32 = arith.constant 0 : i32
    %c0_i32_0 = arith.constant 0 : i32
    %c0_i32_1 = arith.constant 0 : i32
    return %arg0, %c0_i32, %c0_i32_0 : i32, i32, i32
  }
  func.func @transform_1(%arg0: i32) -> (i32, i32) {
    %c0_i32 = arith.constant 0 : i32
    %c0_i32_0 = arith.constant 0 : i32
    %c0_i32_1 = arith.constant 0 : i32
    return %c0_i32, %c0_i32_0 : i32, i32
  }
  func.func @transform_2(%arg0: i32) -> (i32, i32) {
    %c0_i32 = arith.constant 0 : i32
    %c0_i32_0 = arith.constant 0 : i32
    %c0_i32_1 = arith.constant 0 : i32
    return %c0_i32, %c0_i32_0 : i32, i32
  }
  func.func @transform_3(%arg0: i32) -> (i32, i32) {
    %c0_i32 = arith.constant 0 : i32
    %c0_i32_0 = arith.constant 0 : i32
    %c0_i32_1 = arith.constant 0 : i32
    return %c0_i32, %c0_i32_0 : i32, i32
  }
  func.func @transform_4(%arg0: i32) -> (i32, i32) {
    %c0_i32 = arith.constant 0 : i32
    %c0_i32_0 = arith.constant 0 : i32
    %c0_i32_1 = arith.constant 0 : i32
    return %c0_i32, %c0_i32_0 : i32, i32
  }
  func.func @transform_5(%arg0: i32) -> (i32, i32) {
    %c0_i32 = arith.constant 0 : i32
    %c0_i32_0 = arith.constant 0 : i32
    %c0_i32_1 = arith.constant 0 : i32
    return %c0_i32, %c0_i32_0 : i32, i32
  }
  func.func @transform_6(%arg0: i32) -> (i32, i32) {
    %c0_i32 = arith.constant 0 : i32
    %c0_i32_0 = arith.constant 0 : i32
    %c0_i32_1 = arith.constant 0 : i32
    return %c0_i32, %c0_i32_0 : i32, i32
  }
  func.func @transform_7(%arg0: i32) -> (i32, i32) {
    %c0_i32 = arith.constant 0 : i32
    %c0_i32_0 = arith.constant 0 : i32
    %c0_i32_1 = arith.constant 0 : i32
    return %c0_i32, %c0_i32_0 : i32, i32
  }
  func.func @transform_8(%arg0: i32) -> (i32, i32) {
    %c0_i32 = arith.constant 0 : i32
    %c0_i32_0 = arith.constant 0 : i32
    %c0_i32_1 = arith.constant 0 : i32
    return %c0_i32, %c0_i32_0 : i32, i32
  }
  func.func @transform_9(%arg0: i32) -> (i32, i32) {
    %c0_i32 = arith.constant 0 : i32
    %c0_i32_0 = arith.constant 0 : i32
    %c0_i32_1 = arith.constant 0 : i32
    return %c0_i32, %c0_i32_0 : i32, i32
  }
  func.func @transform_10(%arg0: i32) -> (i32, i32, i32) {
    %c0_i32 = arith.constant 0 : i32
    %c0_i32_0 = arith.constant 0 : i32
    %c0_i32_1 = arith.constant 0 : i32
    return %arg0, %c0_i32, %c0_i32_0 : i32, i32, i32
  }
}

</mosaic_0001>

<bundles_post_ra>
// kernel: spatial_attention_pallas.1
= control target key start
LH: loop header
LB: loop body
LE: loop exit
PB: predicated region body
PF: predicated region fallthrough
CT: control target
= control target key end

     0   :  { %s938_s15 = smov 0   ;;  %s1195_s0 = inlined_call_operand.vmem [shape: bf16[2,64,256], index: 0, kind: input, shape index: {}]   ;;  %s1196_s1 = inlined_call_operand.vmem [shape: f32[72,256], index: 1, kind: input, shape index: {}]   ;;  %s1197_s2 = inlined_call_operand.vmem [shape: bf16[8,64], index: 2, kind: input, shape index: {}]   ;;  %s1198_s3 = inlined_call_operand.vmem [shape: f32[8,1], index: 3, kind: input, shape index: {}]   ;;  %s1199_s4 = inlined_call_operand.vmem [shape: f32[8,72], index: 4, kind: input, shape index: {}]   ;;  %s1200_s5 = inlined_call_operand.vmem [shape: f32[8,1], index: 5, kind: input, shape index: {}]   ;;  %s1201_s6 = inlined_call_operand.vmem [shape: f32[8,72], index: 6, kind: input, shape index: {}]   ;;  %s1202_s7 = inlined_call_operand.vmem [shape: f32[8,1], index: 7, kind: input, shape index: {}]   ;;  %s1203_s8 = inlined_call_operand.vmem [shape: f32[1,8], index: 8, kind: input, shape index: {}]   ;;  %s1204_s9 = inlined_call_operand.<no memory space> [shape: f32[1,1], index: 9, kind: input, shape index: {}]   ;;  %s1205_s10 = inlined_call_operand.vmem [shape: f32[2,1,256], index: 10, kind: output, shape index: {}]  }
   0x1   :  { %v15_v0 = vstv %s1204_s9 }
   0x2   :  { %16 = vst [vmem:[#allocation2] sm:$0x1] %v15_v0 }
   0x3 LB: > { %s790_s16 = sadd.s32 4294967295, %s872_s15   ;;  %p794_p0 = scmp.ge.s32.totalorder %s872_s15, 1  ;;  %s872_s15 = sphi %s938_s15, %s22_s15  }
   0x4   : > { %p314_p1 = scmp.lt.s32.totalorder %s872_s15, 3 }
   0x6   : > { %p315_p2 = pnand %p794_p0, %p314_p1 }
   0x7   : > { %p351_p3 = scmp.lt.s32.totalorder (!%p315_p2), %s790_s16, 1  ;;  %s875_s24 = smov (!%p315_p2), 60  }
   0x8   : > { %318 = sbr.rel (%p315_p2) target bundleno = 868 (0x364), region = 60  ;;  %s876_s25 = smov (!%p315_p2), 64  }
   0x9   : > { %s877_s26 = smov (!%p315_p2), 68   ;;  %s878_s27 = smov (!%p315_p2), 4  }
   0xa   : > { %s879_s28 = smov (!%p315_p2), 124  }
   0xd   : > { %v388_v1 = vld [vmem:[%s1198_s3] sm:$0xff]  ;;  %v874_v2 = vmov 0   ;;  %s1207_s16 = smov (!%p351_p3, %s790_s16), 1  ;;  %vm434_vm0 = vcmask 523264   ;;  %v472_v37 = vlaneseq  ;;  %v994_v42 = vld [vmem:[%s1196_s1 + $0x88] sm:$0xff]  ;;  %v1010_v51 = vld [vmem:[%s1196_s1 + $0x70] sm:$0xff] }
   0xe   : > { %863 = vset.pattern.permute.xlu0 %v874_v2  ;;  %864 = vset.pattern.permute.xlu2 %v874_v2  ;;  %s840_s9 = sshll.u32 %s1207_s16, 6  ;;  %v387_v27 = vld [vmem:[%s1197_s2] sm:$0xf]  ;;  %v1015_v52 = vld [vmem:[%s1196_s1 + $0x78] sm:$0xff]  ;;  %v1033_v59 = vld [vmem:[%s1196_s1 + $0x68] sm:$0xff]  ;;  %vm528_vm6 = vcmask 588800  }
   0xf   : > { %391 = vperm.xlu0 %863, %v388_v1   ;;  %865 = vset.pattern.permute.xlu1 %v874_v2  ;;  %s355_s21 = scalar_lea.vmem %s1195_s0, %s840_s9  ;;  %v983_v38 = vand.u32 127, %v472_v37  ;;  %v989_v41 = vld [vmem:[%s1196_s1 + $0x80] sm:$0xff]  ;;  %v1043_v0 = vld [vmem:[%s1196_s1 + $0x50] sm:$0xff]  ;;  %v1048_v1 = vld [vmem:[%s1196_s1 + $0x58] sm:$0xff]  ;;  %vm682_vm7 = vcmask 64512   ;;  %s797_s23 = sshll.u32 %s1207_s16, 1 }
  0x10   : > { %v824_v3 = vld [vmem:[%s355_s21 + $0x30] sm:$0xf]  ;;  %v848_v4 = vld [vmem:[%s355_s21 + $0x34] sm:$0xf0]  ;;  %v847_v5 = vld [vmem:[%s355_s21 + $0x34] sm:$0xf]  ;;  %s359_s11 = scalar_lea.vmem %s1205_s10, %s797_s23 }
  0x11   : > { %v825_v6 = vor.u32 %v848_v4, %v824_v3  ;;  %v826_v7 = vld [vmem:[%s355_s21 + $0x38] sm:$0xf0]  ;;  %v816_v8 = vld [vmem:[%s355_s21 + $0x20] sm:$0xf]  ;;  %v846_v9 = vld [vmem:[%s355_s21 + $0x24] sm:$0xf0] }
  0x12   : > { %v829_v10 = vor.u32 %v847_v5, %v826_v7  ;;  %v845_v11 = vld [vmem:[%s355_s21 + $0x24] sm:$0xf]  ;;  %v818_v12 = vld [vmem:[%s355_s21 + $0x28] sm:$0xf0]  ;;  %v817_v13 = vor.u32 %v846_v9, %v816_v8  ;;  %v808_v15 = vld [vmem:[%s355_s21 + $0x10] sm:$0xf] }
  0x13   : > { %442 = vmatpush.bf16.msra.mxu0 %v825_v6  ;;  %v821_v14 = vor.u32 %v845_v11, %v818_v12  ;;  %v844_v16 = vld [vmem:[%s355_s21 + $0x14] sm:$0xf0]  ;;  %v843_v17 = vld [vmem:[%s355_s21 + $0x14] sm:$0xf]  ;;  %v810_v18 = vld [vmem:[%s355_s21 + $0x18] sm:$0xf0] }
  0x14   : > { %455 = vmatpush.bf16.msra.mxu1 %v829_v10  ;;  %v809_v19 = vor.u32 %v844_v16, %v808_v15  ;;  %v813_v20 = vor.u32 %v843_v17, %v810_v18  ;;  %v800_v21 = vld [vmem:[%s355_s21] sm:$0xf]  ;;  %v842_v22 = vld [vmem:[%s355_s21 + $0x4] sm:$0xf0]  ;;  %v841_v23 = vld [vmem:[%s355_s21 + $0x4] sm:$0xf] }
  0x15   : > { %v802_v24 = vld [vmem:[%s355_s21 + $0x8] sm:$0xf0]  ;;  %v801_v25 = vor.u32 %v842_v22, %v800_v21  ;;  %vm488_vm1 = vcmp.lt.s32.totalorder %v983_v38, 60  ;;  %v467_v48 = vld [vmem:[%s1200_s5] sm:$0xff]  ;;  %vm474_vm2 = vcmp.lt.s32.totalorder %v983_v38, 68  ;;  %vm481_vm3 = vcmp.lt.s32.totalorder %v983_v38, 64 }
  0x16   : > { %v805_v26 = vor.u32 %v841_v23, %v802_v24  ;;  %v1028_v58 = vld [vmem:[%s1196_s1 + $0x60] sm:$0xff]  ;;  %vm502_vm4 = vcmp.lt.s32.totalorder %v983_v38, 124  ;;  %v1062_v7 = vld [vmem:[%s1196_s1 + $0x48] sm:$0xff]  ;;  %vm495_vm5 = vcmp.lt.s32.totalorder %v983_v38, 4  ;;  %v1074_v12 = vld [vmem:[%s1196_s1 + $0x30] sm:$0xff]  ;;  %vm729_vm8 = vcmask 1040384  }
  0x17   : > { %443 = vmatpush.bf16.msra.mxu0 %v817_v13  ;;  %v1057_v6 = vld [vmem:[%s1196_s1 + $0x40] sm:$0xff]  ;;  %v1079_v13 = vld [vmem:[%s1196_s1 + $0x38] sm:$0xff]  ;;  %v1100_v22 = vld [vmem:[%s1196_s1 + $0x10] sm:$0xff]  ;;  %vm734_vm9 = vcmp.lt.s32.totalorder %v472_v37, 256 }
  0x18   : > { %456 = vmatpush.bf16.msra.mxu1 %v821_v14  ;;  %v1088_v18 = vld [vmem:[%s1196_s1 + $0x20] sm:$0xff]  ;;  %v1105_v23 = vld [vmem:[%s1196_s1 + $0x18] sm:$0xff] }
  0x1b   : > { %444 = vmatpush.bf16.msra.mxu0 %v809_v19  ;;  %v1093_v19 = vld [vmem:[%s1196_s1 + $0x28] sm:$0xff] }
  0x1c   : > { %457 = vmatpush.bf16.msra.mxu1 %v813_v20 }
  0x1f   : > { %445 = vmatpush.bf16.msra.mxu0 %v801_v25 }
  0x20   : > { %458 = vmatpush.bf16.msra.mxu1 %v805_v26  ;;  %v1112_v26 = vld [vmem:[%s1196_s1] sm:$0xff] }
  0x22   : > { %830 = vmatmul.msk.bf16.vlgmr.msra.gmra.mxu0 %vm434_vm0, %v387_v27 }
  0x23   : > { %831 = vmatmul.msk.bf16.vlgmr.msra.gmra.mxu1 %vm434_vm0, %v387_v27  ;;  %v1117_v27 = vld [vmem:[%s1196_s1 + $0x8] sm:$0xff] }
  0x81   : > { %v392_v28 = vpop.permute.xlu0 %391 }
  0x9f   : > { %v447_v29 = vpop.f32.mrf.mxu0 }
  0xa0   : > { %v448_v30 = vadd.f32 %v447_v29, %v392_v28  ;;  %v460_v31 = vpop.f32.mrf.mxu1 }
  0xa1   : > { %v461_v32 = vadd.f32 %v460_v31, %v392_v28 }
  0xa2   : > { %v958_v33 = vmax.f32 %v448_v30, 0.0 }
  0xa3   : > { %v960_v34 = vmax.f32 %v461_v32, 0.0  ;;  %v466_v32 = vld [vmem:[%s1199_s4] sm:$0xff] }
  0xa4   : > { %484 = vrot.lane.b32.xlu0 %v958_v33, %s875_s24  ;;  %v513_v10 = vmul.f32 %v958_v33, %v1057_v6 }
  0xa5   : > { %479 = vrot.lane.b32.xlu2 %v960_v34, %s876_s25  ;;  %486 = vrot.lane.b32.xlu1 %v960_v34, %s875_s24  ;;  %v514_v11 = vmul.f32 %v960_v34, %v1062_v7 }
  0xa7   : > { %v449_v35 = vpop.f32.mrf.mxu0 }
  0xa8   : > { %v462_v36 = vpop.f32.mrf.mxu1 }
  0xac   : > { %470 = vrot.lane.b32.xlu0 %v960_v34, %s877_s26 }
  0xad   : > { %468 = vrot.lane.b32.xlu2 %v958_v33, %s877_s26  ;;  %477 = vrot.lane.b32.xlu1 %v958_v33, %s876_s25 }
  0xb4   : > { %491 = vrot.lane.b32.xlu0 %v958_v33, %s878_s27 }
  0xb5   : > { %500 = vrot.lane.b32.xlu2 %v960_v34, %s879_s28  ;;  %498 = vrot.lane.b32.xlu1 %v958_v33, %s879_s28 }
  0xbd   : > { %493 = vrot.lane.b32.xlu1 %v960_v34, %s878_s27  ;;  %525 = vperm.xlu2 %864, %v467_v48  }
  0xff   : > { %v480_v39 = vpop.permute.xlu2 %479 }
 0x107   : > { %v469_v49 = vpop.permute.xlu2 %468 }
 0x10f   : > { %v501_v2 = vpop.permute.xlu2 %500 }
 0x116   : > { %v485_v40 = vpop.permute.xlu0 %484 }
 0x117   : > { %v487_v43 = vpop.permute.xlu1 %486  ;;  %v526_v33 = vpop.permute.xlu2 %525 }
 0x118   : > { %v489_v44 = vsel %vm488_vm1, %v485_v40, %v487_v43  ;;  %v490_v45 = vsel %vm488_vm1, %v487_v43, %v485_v40 }
 0x119   : > { %v521_v46 = vmul.f32 %v489_v44, %v989_v41  ;;  %v522_v47 = vmul.f32 %v490_v45, %v994_v42  ;;  %v509_v24 = vmul.f32 %v490_v45, %v1088_v18  ;;  %v510_v25 = vmul.f32 %v489_v44, %v1093_v19  ;;  %v675_v44 = vld [vmem:[#allocation2] sm:$0x1] }
 0x11b   : > { %539 = vmatpush.msra.mxu2 %v521_v46  ;;  %559 = vmatpush.msra.mxu3 %v522_v47 }
 0x11e   : > { %v471_v50 = vpop.permute.xlu0 %470 }
 0x11f   : > { %v478_v53 = vpop.permute.xlu1 %477  ;;  %v475_v54 = vsel %vm474_vm2, %v469_v49, %v471_v50  ;;  %v476_v55 = vsel %vm474_vm2, %v471_v50, %v469_v49 }
 0x120   : > { %v482_v56 = vsel %vm481_vm3, %v478_v53, %v480_v39  ;;  %v483_v57 = vsel %vm481_vm3, %v480_v39, %v478_v53  ;;  %v517_v62 = vmul.f32 %v475_v54, %v1028_v58  ;;  %v518_v63 = vmul.f32 %v476_v55, %v1033_v59 }
 0x121   : > { %v519_v60 = vmul.f32 %v482_v56, %v1010_v51  ;;  %v520_v61 = vmul.f32 %v483_v57, %v1015_v52  ;;  %v507_v28 = vmul.f32 %v483_v57, %v1100_v22  ;;  %v508_v29 = vmul.f32 %v482_v56, %v1105_v23 }
 0x122   : > { %v505_v30 = vmul.f32 %v476_v55, %v1112_v26  ;;  %v506_v31 = vmul.f32 %v475_v54, %v1117_v27  ;;  %v575_v54 = vld [vmem:[%s1202_s7] sm:$0xff] }
 0x123   : > { %540 = vmatpush.msra.mxu2 %v519_v60  ;;  %560 = vmatpush.msra.mxu3 %v520_v61 }
 0x125   : > { %541 = vmatpush.msra.mxu2 %v517_v62  ;;  %561 = vmatpush.msra.mxu3 %v518_v63 }
 0x126   : > { %v492_v14 = vpop.permute.xlu0 %491 }
 0x127   : > { %v499_v3 = vpop.permute.xlu1 %498 }
 0x128   : > { %v503_v4 = vsel %vm502_vm4, %v499_v3, %v501_v2  ;;  %v504_v5 = vsel %vm502_vm4, %v501_v2, %v499_v3 }
 0x129   : > { %v515_v8 = vmul.f32 %v503_v4, %v1043_v0  ;;  %v516_v9 = vmul.f32 %v504_v5, %v1048_v1 }
 0x12b   : > { %542 = vmatpush.msra.mxu2 %v515_v8  ;;  %562 = vmatpush.msra.mxu3 %v516_v9 }
 0x12d   : > { %543 = vmatpush.msra.mxu2 %v513_v10  ;;  %563 = vmatpush.msra.mxu3 %v514_v11 }
 0x12f   : > { %v494_v15 = vpop.permute.xlu1 %493 }
 0x130   : > { %v496_v16 = vsel %vm495_vm5, %v492_v14, %v494_v15  ;;  %v497_v17 = vsel %vm495_vm5, %v494_v15, %v492_v14 }
 0x131   : > { %v511_v20 = vmul.f32 %v497_v17, %v1074_v12  ;;  %v512_v21 = vmul.f32 %v496_v16, %v1079_v13 }
 0x133   : > { %544 = vmatpush.msra.mxu2 %v511_v20  ;;  %564 = vmatpush.msra.mxu3 %v512_v21 }
 0x135   : > { %545 = vmatpush.msra.mxu2 %v509_v24  ;;  %565 = vmatpush.msra.mxu3 %v510_v25  ;;  %v674_v25 = vld [vmem:[%s1203_s8] sm:$0x1] }
 0x137   : > { %546 = vmatpush.msra.mxu2 %v507_v28  ;;  %566 = vmatpush.msra.mxu3 %v508_v29 }
 0x139   : > { %547 = vmatpush.msra.mxu2 %v505_v30  ;;  %567 = vmatpush.msra.mxu3 %v506_v31 }
 0x13a   : > { %832 = vmatmul.msk.f32.vlgmr.msra.gmra.mxu2 %vm528_vm6, %v466_v32  ;;  %833 = vmatmul.msk.f32.vlgmr.msra.gmra.mxu3 %vm528_vm6, %v466_v32 }
 0x1bd   : > { %v549_v34 = vpop.f32.mrf.mxu2  ;;  %v569_v35 = vpop.f32.mrf.mxu3 }
 0x1be   : > { %v550_v36 = vadd.f32 %v549_v34, %v526_v33  ;;  %v570_v39 = vadd.f32 %v569_v35, %v526_v33 }
 0x1c0   : > { %v572_v40 = vmax.f32 %v550_v36, 0.0  ;;  %v573_v43 = vmax.f32 %v570_v39, 0.0 }
 0x1c2   : > { %582 = vrot.lane.b32.xlu2 %v572_v40, %s876_s25  ;;  %588 = vrot.lane.b32.xlu0 %v572_v40, %s875_s24 }
 0x1c3   : > { %590 = vrot.lane.b32.xlu1 %v573_v43, %s875_s24 }
 0x1ca   : > { %578 = vrot.lane.b32.xlu2 %v573_v43, %s877_s26  ;;  %584 = vrot.lane.b32.xlu0 %v573_v43, %s876_s25 }
 0x1cb   : > { %576 = vrot.lane.b32.xlu1 %v572_v40, %s877_s26 }
 0x1d2   : > { %594 = vrot.lane.b32.xlu2 %v572_v40, %s878_s27  ;;  %600 = vrot.lane.b32.xlu0 %v572_v40, %s879_s28 }
 0x1d3   : > { %602 = vrot.lane.b32.xlu1 %v573_v43, %s879_s28 }
 0x1da   : > { %678 = vperm.xlu2 %864, %v675_v44   ;;  %596 = vrot.lane.b32.xlu0 %v573_v43, %s878_s27 }
 0x1db   : > { %626 = vperm.xlu1 %865, %v575_v54  }
 0x21c   : > { %v583_v45 = vpop.permute.xlu2 %582 }
 0x224   : > { %v579_v56 = vpop.permute.xlu2 %578 }
 0x22c   : > { %v595_v10 = vpop.permute.xlu2 %594 }
 0x234   : > { %v589_v46 = vpop.permute.xlu0 %588 }
 0x235   : > { %v591_v47 = vpop.permute.xlu1 %590 }
 0x236   : > { %v592_v48 = vsel %vm488_vm1, %v589_v46, %v591_v47  ;;  %v593_v49 = vsel %vm488_vm1, %v591_v47, %v589_v46 }
 0x237   : > { %v622_v50 = vmul.f32 %v592_v48, %v989_v41  ;;  %v623_v53 = vmul.f32 %v593_v49, %v994_v42 }
 0x239   : > { %639 = vmatpush.msrb.mxu0 %v622_v50  ;;  %659 = vmatpush.msrb.mxu1 %v623_v53 }
 0x23c   : > { %v585_v55 = vpop.permute.xlu0 %584 }
 0x23d   : > { %v586_v57 = vsel %vm481_vm3, %v583_v45, %v585_v55  ;;  %v587_v60 = vsel %vm481_vm3, %v585_v55, %v583_v45  ;;  %v577_v61 = vpop.permute.xlu1 %576 }
 0x23e   : > { %v580_v41 = vsel %vm474_vm2, %v577_v61, %v579_v56  ;;  %v581_v42 = vsel %vm474_vm2, %v579_v56, %v577_v61  ;;  %v620_v62 = vmul.f32 %v586_v57, %v1010_v51  ;;  %v621_v63 = vmul.f32 %v587_v60, %v1015_v52 }
 0x23f   : > { %v618_v2 = vmul.f32 %v580_v41, %v1028_v58  ;;  %v619_v3 = vmul.f32 %v581_v42, %v1033_v59  ;;  %v614_v58 = vmul.f32 %v572_v40, %v1057_v6  ;;  %v615_v59 = vmul.f32 %v573_v43, %v1062_v7 }
 0x240   : > { %640 = vmatpush.msrb.mxu0 %v620_v62  ;;  %660 = vmatpush.msrb.mxu1 %v621_v63  ;;  %v610_v6 = vmul.f32 %v593_v49, %v1088_v18  ;;  %v611_v7 = vmul.f32 %v592_v48, %v1093_v19  ;;  %v608_v16 = vmul.f32 %v587_v60, %v1100_v22 }
 0x241   : > { %v609_v17 = vmul.f32 %v586_v57, %v1105_v23  ;;  %v606_v38 = vmul.f32 %v581_v42, %v1112_v26  ;;  %v679_v26 = vpop.permute.xlu2 %678 }
 0x242   : > { %641 = vmatpush.msrb.mxu0 %v618_v2  ;;  %661 = vmatpush.msrb.mxu1 %v619_v3 }
 0x244   : > { %v601_v4 = vpop.permute.xlu0 %600 }
 0x245   : > { %v603_v5 = vpop.permute.xlu1 %602 }
 0x246   : > { %v604_v8 = vsel %vm502_vm4, %v601_v4, %v603_v5  ;;  %v605_v9 = vsel %vm502_vm4, %v603_v5, %v601_v4 }
 0x247   : > { %v616_v51 = vmul.f32 %v604_v8, %v1043_v0  ;;  %v617_v52 = vmul.f32 %v605_v9, %v1048_v1 }
 0x249   : > { %642 = vmatpush.msrb.mxu0 %v616_v51  ;;  %662 = vmatpush.msrb.mxu1 %v617_v52 }
 0x24b   : > { %643 = vmatpush.msrb.mxu0 %v614_v58  ;;  %663 = vmatpush.msrb.mxu1 %v615_v59 }
 0x24c   : > { %v597_v11 = vpop.permute.xlu0 %596 }
 0x24d   : > { %v598_v14 = vsel %vm495_vm5, %v595_v10, %v597_v11  ;;  %v599_v15 = vsel %vm495_vm5, %v597_v11, %v595_v10  ;;  %v627_v18 = vpop.permute.xlu1 %626 }
 0x24e   : > { %v612_v0 = vmul.f32 %v599_v15, %v1074_v12  ;;  %v613_v1 = vmul.f32 %v598_v14, %v1079_v13  ;;  %v607_v12 = vmul.f32 %v580_v41, %v1117_v27  ;;  %v574_v13 = vld [vmem:[%s1201_s6] sm:$0xff]  ;;  %v681_v27 = vperm.slane %v679_v26, 0 }
 0x250   : > { %644 = vmatpush.msrb.mxu0 %v612_v0  ;;  %664 = vmatpush.msrb.mxu1 %v613_v1 }
 0x252   : > { %645 = vmatpush.msrb.mxu0 %v610_v6  ;;  %665 = vmatpush.msrb.mxu1 %v611_v7 }
 0x254   : > { %646 = vmatpush.msrb.mxu0 %v608_v16  ;;  %666 = vmatpush.msrb.mxu1 %v609_v17 }
 0x256   : > { %647 = vmatpush.msrb.mxu0 %v606_v38  ;;  %667 = vmatpush.msrb.mxu1 %v607_v12 }
 0x257   : > { %834 = vmatmul.msk.f32.vlgmr.msrb.gmra.mxu0 %vm528_vm6, %v574_v13  ;;  %835 = vmatmul.msk.f32.vlgmr.msrb.gmra.mxu1 %vm528_vm6, %v574_v13 }
 0x2d4   : > { %v649_v19 = vpop.f32.mrf.mxu0  ;;  %v669_v20 = vpop.f32.mrf.mxu1 }
 0x2d5   : > { %v650_v21 = vadd.f32 %v649_v19, %v627_v18  ;;  %v670_v22 = vadd.f32 %v669_v20, %v627_v18 }
 0x2d7   : > { %v672_v23 = vmax.f32 %v650_v21, 0.0  ;;  %v673_v24 = vmax.f32 %v670_v22, 0.0 }
 0x2d9   : > { %701 = vmatpush.msrb.mxu2 %v672_v23  ;;  %721 = vmatpush.msrb.mxu3 %v673_v24 }
 0x2da   : > { %836 = vmatmul.msk.f32.vlgmr.msrb.gmra.mxu2 %vm682_vm7, %v674_v25  ;;  %837 = vmatmul.msk.f32.vlgmr.msrb.gmra.mxu3 %vm682_vm7, %v674_v25 }
 0x35d   : > { %v703_v28 = vpop.f32.mrf.mxu2  ;;  %v723_v29 = vpop.f32.mrf.mxu3 }
 0x35e   : > { %v724_v30 = vadd.f32 %v723_v29, %v681_v27  ;;  %v704_v31 = vadd.f32 %v703_v28, %v681_v27 }
 0x360   : > { %v728_v32 = vrot.slane %v724_v30, 7 }
 0x362   : > { %v730_v33 = vsel %vm729_vm8, %v704_v31, %v728_v32 }
 0x363   : > { %736 = vst.msk [vmem:[%s359_s11] sm:$0x3] %vm734_vm9, %v730_v33 }
 0x364 PF: > { %s22_s15 = sadd.s32 1, %s872_s15  }
 0x365   : > { %p19_p4 = scmp.ge.s32.totalorder %s22_s15, 4  }
 0x367   :  { %21 = sbr.rel (!%p19_p4) target bundleno = 3 (0x3), region = 90 }

</bundles_post_ra>
